<compile_context>
chip_gen: v6e
topology: v6e:2x2x1
jax: 0.10.0
libtpu: 0.0.40
codegen_flags: <defaults>
</compile_context>

<pallas_src>
import jax
import jax.numpy as jnp
from jax.experimental import pallas as pl
from jax.experimental.pallas import tpu as pltpu

SEQ = 16
HID = 768
EPS = 1e-12  # matches nn.LayerNorm(768, eps=1e-12) in the module


def _pos_emb_layernorm_kernel(emb_ref, pos_ref, gamma_ref, beta_ref, out_ref):
    # emb_ref:   (B_TILE, SEQ, HID)  batch-chunk of embeddings
    # pos_ref:   (SEQ, HID)          position embedding table (resident, constant index)
    # gamma_ref: (1, HID)            LayerNorm weight
    # beta_ref:  (1, HID)            LayerNorm bias
    x = emb_ref[...]
    if x.dtype != jnp.float32:            # trace-time branch; no-op for f32 inputs
        x = x.astype(jnp.float32)
    x = x + pos_ref[...][None, :, :]

    # One-pass mean / variance: var = E[x^2] - mean^2 (f32 accumulation).
    mean = jnp.mean(x, axis=-1, keepdims=True)
    mean_sq = jnp.mean(x * x, axis=-1, keepdims=True)
    var = mean_sq - mean * mean
    inv = jax.lax.rsqrt(var + EPS)

    y = (x - mean) * inv
    y = y * gamma_ref[...][None, :, :] + beta_ref[...][None, :, :]
    # TODO(synk): dropout(p=0.1) is identity in eval mode; training-mode RNG masking omitted.
    out_ref[...] = y.astype(out_ref.dtype)


def position_embedding_for_video(embeddings, pos_table, gamma, beta, *, b_tile=None):
    """embeddings: (B, 16, 768). Returns (B, 16, 768), same dtype."""
    B, S, H = embeddings.shape
    assert S == SEQ and H == HID

    # Choose a batch-tile: up to 32 batch elements (= 1.5 MiB f32 per block buffer,
    # ~6 MiB with in+out double buffering — fits v5e's 16 MiB scoped-VMEM default,
    # v6e's 32 MiB, and v7x's 64 MiB physical VMEM).  Pick the largest divisor of B
    # so every block is full-size (no ragged last block).
    if b_tile is None:
        b_tile = min(B, 32)
    b_tile = max(1, min(b_tile, B))
    while B % b_tile != 0:
        b_tile -= 1
    grid_b = B // b_tile

    gamma2 = gamma.reshape(1, HID)
    beta2 = beta.reshape(1, HID)

    return pl.pallas_call(
        _pos_emb_layernorm_kernel,
        out_shape=jax.ShapeDtypeStruct((B, SEQ, HID), embeddings.dtype),
        grid_spec=pl.GridSpec(
            grid=(grid_b,),
            in_specs=[
                pl.BlockSpec((b_tile, SEQ, HID), lambda i: (i, 0, 0)),  # embeddings
                pl.BlockSpec((SEQ, HID), lambda i: (0, 0)),             # pos table (resident)
                pl.BlockSpec((1, HID), lambda i: (0, 0)),               # gamma (resident)
                pl.BlockSpec((1, HID), lambda i: (0, 0)),               # beta (resident)
            ],
            out_specs=pl.BlockSpec((b_tile, SEQ, HID), lambda i: (i, 0, 0)),
        ),
        compiler_params=pltpu.CompilerParams(
            dimension_semantics=("parallel",),  # shards across v7x's 2 TCs when grid > 1
        ),
    )(embeddings, pos_table, gamma2, beta2)


def reference(embeddings, pos_table, gamma, beta):
    x = embeddings + pos_table[None, :, :]
    mean = jnp.mean(x, axis=-1, keepdims=True)
    var = jnp.mean((x - mean) ** 2, axis=-1, keepdims=True)
    y = (x - mean) / jnp.sqrt(var + EPS)
    return y * gamma + beta


if __name__ == "__main__":
    key = jax.random.PRNGKey(0)
    k1, k2, k3, k4 = jax.random.split(key, 4)

    # Synthetic parameters mimicking nn.Embedding(16, 768) / nn.LayerNorm(768).
    pos_table = jax.random.normal(k1, (SEQ, HID), dtype=jnp.float32) * 0.02
    gamma = jnp.ones((HID,), dtype=jnp.float32) + 0.01 * jax.random.normal(k2, (HID,), dtype=jnp.float32)
    beta = 0.01 * jax.random.normal(k3, (HID,), dtype=jnp.float32)

    # Small-batch case: whole problem handled in a single grid step.
    B = 2
    embeddings = jax.random.normal(k4, (B, SEQ, HID), dtype=jnp.float32)
    out = position_embedding_for_video(embeddings, pos_table, gamma, beta)
    out = jax.block_until_ready(out)
    ref = reference(embeddings, pos_table, gamma, beta)
    assert out.shape == (B, SEQ, HID)
    assert jnp.allclose(out, ref, atol=1e-5, rtol=1e-5), "mismatch vs reference (B=2)"

    # Multi-step grid case (exercises the pipelined path with grid > 1).
    B2 = 6
    emb2 = jax.random.normal(jax.random.PRNGKey(7), (B2, SEQ, HID), dtype=jnp.float32)
    out2 = position_embedding_for_video(emb2, pos_table, gamma, beta, b_tile=2)
    out2 = jax.block_until_ready(out2)
    ref2 = reference(emb2, pos_table, gamma, beta)
    assert jnp.allclose(out2, ref2, atol=1e-5, rtol=1e-5), "mismatch vs reference (B=6, tiled)"

    print("KERNEL_OK")
</pallas_src>

<mosaic_0001>
module attributes {stable_mosaic.version = 11 : i64} {
  func.func @_pos_emb_layernorm_kernel(%arg0: i32, %arg1: memref<2x16x768xf32, #tpu.memory_space<vmem>>, %arg2: memref<16x768xf32, #tpu.memory_space<vmem>>, %arg3: memref<1x768xf32, #tpu.memory_space<vmem>>, %arg4: memref<1x768xf32, #tpu.memory_space<vmem>>, %arg5: memref<2x16x768xf32, #tpu.memory_space<vmem>>) attributes {dimension_semantics = [#tpu.dimension_semantics<parallel>], iteration_bounds = array<i64: 1>, scalar_prefetch = 0 : i64, scratch_operands = 0 : i64, tpu.core_type = #tpu.core_type<tc>, window_params = [{transform_indices = @transform_0, window_bounds = array<i64: 2, 16, 768>}, {pipeline_mode = #tpu.pipeline_mode<synchronous>, transform_indices = @transform_1, window_bounds = array<i64: 16, 768>}, {pipeline_mode = #tpu.pipeline_mode<synchronous>, transform_indices = @transform_2, window_bounds = array<i64: 1, 768>}, {pipeline_mode = #tpu.pipeline_mode<synchronous>, transform_indices = @transform_3, window_bounds = array<i64: 1, 768>}, {transform_indices = @transform_4, window_bounds = array<i64: 2, 16, 768>}]} {
    %c0 = arith.constant 0 : index
    %c0_0 = arith.constant 0 : index
    %c0_1 = arith.constant 0 : index
    %0 = vector.load %arg1[%c0, %c0_0, %c0_1] : memref<2x16x768xf32, #tpu.memory_space<vmem>>, vector<2x16x768xf32>
    %c0_2 = arith.constant 0 : index
    %c0_3 = arith.constant 0 : index
    %1 = vector.load %arg2[%c0_2, %c0_3] : memref<16x768xf32, #tpu.memory_space<vmem>>, vector<16x768xf32>
    %2 = vector.shape_cast %1 : vector<16x768xf32> to vector<1x16x768xf32>
    %3 = vector.broadcast %2 : vector<1x16x768xf32> to vector<2x16x768xf32>
    %4 = arith.addf %0, %3 : vector<2x16x768xf32>
    %cst = arith.constant dense<0.000000e+00> : vector<2x16xf32>
    %5 = vector.multi_reduction <add>, %4, %cst [2] : vector<2x16x768xf32> to vector<2x16xf32>
    %6 = vector.shape_cast %5 : vector<2x16xf32> to vector<2x16x1xf32>
    %cst_4 = arith.constant 7.680000e+02 : f32
    %7 = vector.broadcast %cst_4 : f32 to vector<2x16x1xf32>
    %8 = arith.divf %6, %7 : vector<2x16x1xf32>
    %9 = arith.mulf %4, %4 : vector<2x16x768xf32>
    %cst_5 = arith.constant dense<0.000000e+00> : vector<2x16xf32>
    %10 = vector.multi_reduction <add>, %9, %cst_5 [2] : vector<2x16x768xf32> to vector<2x16xf32>
    %11 = vector.shape_cast %10 : vector<2x16xf32> to vector<2x16x1xf32>
    %cst_6 = arith.constant 7.680000e+02 : f32
    %12 = vector.broadcast %cst_6 : f32 to vector<2x16x1xf32>
    %13 = arith.divf %11, %12 : vector<2x16x1xf32>
    %14 = arith.mulf %8, %8 : vector<2x16x1xf32>
    %15 = arith.subf %13, %14 : vector<2x16x1xf32>
    %cst_7 = arith.constant 9.99999996E-13 : f32
    %16 = vector.broadcast %cst_7 : f32 to vector<2x16x1xf32>
    %17 = arith.addf %15, %16 : vector<2x16x1xf32>
    %18 = math.rsqrt %17 : vector<2x16x1xf32>
    %19 = vector.broadcast %8 : vector<2x16x1xf32> to vector<2x16x768xf32>
    %20 = arith.subf %4, %19 : vector<2x16x768xf32>
    %21 = vector.broadcast %18 : vector<2x16x1xf32> to vector<2x16x768xf32>
    %22 = arith.mulf %20, %21 : vector<2x16x768xf32>
    %c0_8 = arith.constant 0 : index
    %c0_9 = arith.constant 0 : index
    %23 = vector.load %arg3[%c0_8, %c0_9] : memref<1x768xf32, #tpu.memory_space<vmem>>, vector<1x768xf32>
    %24 = vector.shape_cast %23 : vector<1x768xf32> to vector<1x1x768xf32>
    %25 = vector.broadcast %24 : vector<1x1x768xf32> to vector<2x16x768xf32>
    %26 = arith.mulf %22, %25 : vector<2x16x768xf32>
    %c0_10 = arith.constant 0 : index
    %c0_11 = arith.constant 0 : index
    %27 = vector.load %arg4[%c0_10, %c0_11] : memref<1x768xf32, #tpu.memory_space<vmem>>, vector<1x768xf32>
    %28 = vector.shape_cast %27 : vector<1x768xf32> to vector<1x1x768xf32>
    %29 = vector.broadcast %28 : vector<1x1x768xf32> to vector<2x16x768xf32>
    %30 = arith.addf %26, %29 : vector<2x16x768xf32>
    %c0_12 = arith.constant 0 : index
    %c0_13 = arith.constant 0 : index
    %c0_14 = arith.constant 0 : index
    %31 = vector.load %arg5[%c0_12, %c0_13, %c0_14] : memref<2x16x768xf32, #tpu.memory_space<vmem>>, vector<2x16x768xf32>
    tpu.vector_store %arg5[%c0_12, %c0_13, %c0_14], %30 {strides = array<i32>} : memref<2x16x768xf32, #tpu.memory_space<vmem>>, vector<2x16x768xf32>,
    return
  }
  func.func @transform_0(%arg0: i32) -> (i32, i32, i32) {
    %c0_i32 = arith.constant 0 : i32
    %c0_i32_0 = arith.constant 0 : i32
    %c0_i32_1 = arith.constant 0 : i32
    return %arg0, %c0_i32, %c0_i32_0 : i32, i32, i32
  }
  func.func @transform_1(%arg0: i32) -> (i32, i32) {
    %c0_i32 = arith.constant 0 : i32
    %c0_i32_0 = arith.constant 0 : i32
    %c0_i32_1 = arith.constant 0 : i32
    return %c0_i32, %c0_i32_0 : i32, i32
  }
  func.func @transform_2(%arg0: i32) -> (i32, i32) {
    %c0_i32 = arith.constant 0 : i32
    %c0_i32_0 = arith.constant 0 : i32
    %c0_i32_1 = arith.constant 0 : i32
    return %c0_i32, %c0_i32_0 : i32, i32
  }
  func.func @transform_3(%arg0: i32) -> (i32, i32) {
    %c0_i32 = arith.constant 0 : i32
    %c0_i32_0 = arith.constant 0 : i32
    %c0_i32_1 = arith.constant 0 : i32
    return %c0_i32, %c0_i32_0 : i32, i32
  }
  func.func @transform_4(%arg0: i32) -> (i32, i32, i32) {
    %c0_i32 = arith.constant 0 : i32
    %c0_i32_0 = arith.constant 0 : i32
    %c0_i32_1 = arith.constant 0 : i32
    return %arg0, %c0_i32, %c0_i32_0 : i32, i32, i32
  }
}

</mosaic_0001>

<bundles_post_ra>
// kernel: tpu_custom_call.1
= control target key start
LH: loop header
LB: loop body
LE: loop exit
PB: predicated region body
PF: predicated region fallthrough
CT: control target
= control target key end

     0   :  { %9 = vsyncpa [#allocation3], 0  ;;  %s893_s0 = inlined_call_operand.hbm [shape: f32[2,16,768], index: 0, kind: input, shape index: {}]   ;;  %s894_s1 = inlined_call_operand.hbm [shape: f32[16,768], index: 1, kind: input, shape index: {}]   ;;  %s895_s2 = inlined_call_operand.hbm [shape: f32[1,768], index: 2, kind: input, shape index: {}]   ;;  %s896_s3 = inlined_call_operand.hbm [shape: f32[1,768], index: 3, kind: input, shape index: {}]   ;;  %s897_s4 = inlined_call_operand.hbm [shape: f32[2,16,768], index: 4, kind: output, shape index: {}]  }
   0x1   :  { %10 = vsyncpa [#allocation6], 0 }
   0x2   :  { %11 = vsyncpa [#allocation9], 0 }
   0x3   :  { %12 = vsyncpa [#allocation4], 0  ;;  %s560_s15 = smov [#allocation5]   ;;  %s561_s17 = smov [#allocation2]  }
   0x4   :  { %s30_s16 = sshll.u32 %s560_s15, 4  ;;  %s18_s18 = sshll.u32 %s561_s17, 4  ;;  %s31_s16 = int_to_ptr.vmem [resolvable:$true] %s30_s16  ;;  %s19_s18 = int_to_ptr.vmem [resolvable:$true] %s18_s18 }
   0x5   :  { %s460_s19 = scalar_lea.vmem %s31_s16, 1536  ;;  %p465_p1 = scmp.lt.s32.totalorder %s31_s16, %s31_s16 }
   0x6   :  { %p461_p0 = scmp.ne.s32.totalorder %s31_s16, %s460_s19  ;;  %p466_p2 = scmp.lt.s32.totalorder %s460_s19, %s460_s19 }
   0x8   :  { %p467_p3 = por %p466_p2, %p465_p1 }
   0xa   :  { %p468_p4 = pnand %p467_p3, %p461_p0 }
   0xc   :  { %471 = shalt.err (!%p468_p4)
}
   0xd   :  { %s562_s20 = smov 768   ;;  %s563_s21 = smov 48  }
   0xe   :  { %36 = dma.hbm_to_vmem [thread:$0]  %s894_s1, 1536, %s31_s16, [#allocation6], %s562_s20, %s562_s20, %s563_s21  }
   0xf   :  { %s480_s24 = scalar_lea.vmem %s19_s18, 3072  ;;  %p485_p6 = scmp.lt.s32.totalorder %s19_s18, %s19_s18 }
  0x10   :  { %p481_p5 = scmp.ne.s32.totalorder %s19_s18, %s480_s24  ;;  %p486_p7 = scmp.lt.s32.totalorder %s480_s24, %s480_s24 }
  0x12   :  { %p487_p8 = por %p486_p7, %p485_p6 }
  0x14   :  { %p488_p9 = pnand %p487_p8, %p481_p5 }
  0x16   :  { %491 = shalt.err (!%p488_p9)
}
  0x17   :  { %24 = dma.hbm_to_vmem [thread:$0]  %s893_s0, 3072, %s19_s18, [#allocation3], %s562_s20, %s562_s20, %s563_s21  }
  0x18   :  { %s564_s27 = smov [#allocation7]   ;;  %s565_s29 = smov [#allocation8]  }
  0x19   :  { %s43_s28 = sshll.u32 %s564_s27, 4  ;;  %s53_s30 = sshll.u32 %s565_s29, 4  ;;  %s44_s28 = int_to_ptr.vmem [resolvable:$true] %s43_s28  ;;  %s54_s30 = int_to_ptr.vmem [resolvable:$true] %s53_s30 }
  0x1a   :  { %s500_s1 = scalar_lea.vmem %s44_s28, 96  ;;  %p505_p11 = scmp.lt.s32.totalorder %s44_s28, %s44_s28 }
  0x1b   :  { %p501_p10 = scmp.ne.s32.totalorder %s44_s28, %s500_s1  ;;  %p506_p12 = scmp.lt.s32.totalorder %s500_s1, %s500_s1 }
  0x1d   :  { %p507_p13 = por %p506_p12, %p505_p11 }
  0x1f   :  { %p508_p0 = pnand %p507_p13, %p501_p10 }
  0x21   :  { %511 = shalt.err (!%p508_p0)
}
  0x22   :  { %46 = dma.hbm_to_vmem [thread:$0]  %s895_s2, 96, %s44_s28, [#allocation6]  }
  0x23   :  { %s520_s7 = scalar_lea.vmem %s54_s30, 96  ;;  %p525_p2 = scmp.lt.s32.totalorder %s54_s30, %s54_s30 }
  0x24   :  { %p521_p1 = scmp.ne.s32.totalorder %s54_s30, %s520_s7  ;;  %p526_p3 = scmp.lt.s32.totalorder %s520_s7, %s520_s7 }
  0x26   :  { %p527_p4 = por %p526_p3, %p525_p2 }
  0x28   :  { %p528_p5 = pnand %p527_p4, %p521_p1 }
  0x2a   :  { %531 = shalt.err (!%p528_p5)
}
  0x2b   :  { %56 = dma.hbm_to_vmem [thread:$0]  %s896_s3, 96, %s54_s30, [#allocation9]  }
  0x2c   :  { %552 = dma.done.wait [#allocation3], 3072  }
  0x2d   :  { %553 = vsyncadd [#allocation3], 4294964224 }
  0x2e   :  { %554 = dma.done.wait [#allocation6], 1632  }
  0x2f   :  { %555 = vsyncadd [#allocation6], 4294965664 }
  0x30   :  { %556 = dma.done.wait [#allocation9], 96  }
  0x31   :  { %557 = vsyncadd [#allocation9], 4294967200  ;;  %v81_v0 = vld [vmem:[#allocation2 + $0x60] sm:$0xff]  ;;  %v82_v1 = vld [vmem:[#allocation2 + $0x68] sm:$0xff]  ;;  %s566_s2 = smov [#allocation10]  }
  0x32   :  { %v83_v2 = vld [vmem:[#allocation2 + $0x70] sm:$0xff]  ;;  %v84_v3 = vld [vmem:[#allocation2 + $0x78] sm:$0xff]  ;;  %v85_v4 = vld [vmem:[#allocation2 + $0x80] sm:$0xff]  ;;  %s423_s3 = sshll.u32 %s566_s2, 4  ;;  %s424_s3 = int_to_ptr.vmem [resolvable:$true] %s423_s3 }
  0x33   :  { %v86_v5 = vld [vmem:[#allocation2 + $0x88] sm:$0xff]  ;;  %v93_v6 = vld [vmem:[#allocation5] sm:$0xff]  ;;  %v95_v8 = vld [vmem:[#allocation5 + $0x10] sm:$0xff]  ;;  %s532_s9 = scalar_lea.vmem %s424_s3, 3072  ;;  %p537_p7 = scmp.lt.s32.totalorder %s424_s3, %s424_s3 }
  0x34   :  { %v94_v7 = vld [vmem:[#allocation5 + $0x8] sm:$0xff]  ;;  %v96_v9 = vld [vmem:[#allocation5 + $0x18] sm:$0xff]  ;;  %v97_v10 = vld [vmem:[#allocation5 + $0x20] sm:$0xff]  ;;  %v610_v12 = vadd.f32 %v93_v6, %v81_v0  ;;  %v614_v14 = vadd.f32 %v95_v8, %v83_v2  ;;  %p533_p6 = scmp.ne.s32.totalorder %s424_s3, %s532_s9  ;;  %p538_p8 = scmp.lt.s32.totalorder %s532_s9, %s532_s9 }
  0x35   :  { %v98_v11 = vld [vmem:[#allocation5 + $0x28] sm:$0xff]  ;;  %v612_v13 = vadd.f32 %v94_v7, %v82_v1  ;;  %v616_v15 = vadd.f32 %v96_v9, %v84_v3  ;;  %v69_v16 = vld [vmem:[#allocation2] sm:$0xff]  ;;  %v71_v18 = vld [vmem:[#allocation2 + $0x10] sm:$0xff]  ;;  %v626_v26 = vadd.f32 %v97_v10, %v85_v4 }
  0x36   :  { %v70_v17 = vld [vmem:[#allocation2 + $0x8] sm:$0xff]  ;;  %v72_v20 = vld [vmem:[#allocation2 + $0x18] sm:$0xff]  ;;  %v73_v21 = vld [vmem:[#allocation2 + $0x20] sm:$0xff]  ;;  %v620_v23 = vadd.f32 %v93_v6, %v69_v16  ;;  %v624_v25 = vadd.f32 %v95_v8, %v71_v18  ;;  %v628_v27 = vadd.f32 %v98_v11, %v86_v5  ;;  %v641_v39 = vmul.f32 %v610_v12, %v610_v12  ;;  %p539_p9 = por %p538_p8, %p537_p7 }
  0x37   :  { %v143_v19 = vadd.f32 %v612_v13, %v610_v12  ;;  %v74_v22 = vld [vmem:[#allocation2 + $0x28] sm:$0xff]  ;;  %v622_v24 = vadd.f32 %v94_v7, %v70_v17  ;;  %v630_v28 = vadd.f32 %v96_v9, %v72_v20  ;;  %v632_v29 = vadd.f32 %v97_v10, %v73_v21  ;;  %v87_v30 = vld [vmem:[#allocation2 + $0x90] sm:$0xff]  ;;  %v88_v31 = vld [vmem:[#allocation2 + $0x98] sm:$0xff] }
  0x38   :  { %v89_v32 = vld [vmem:[#allocation2 + $0xa0] sm:$0xff]  ;;  %v635_v34 = vadd.f32 %v98_v11, %v74_v22  ;;  %v90_v36 = vld [vmem:[#allocation2 + $0xa8] sm:$0xff]  ;;  %v91_v37 = vld [vmem:[#allocation2 + $0xb0] sm:$0xff]  ;;  %v162_v43 = vmul.f32 %v620_v23, %v620_v23  ;;  %v164_v45 = vmul.f32 %v624_v25, %v624_v25  ;;  %p540_p10 = pnand %p539_p9, %p533_p6 }
  0x39   :  { %v144_v33 = vadd.f32 %v143_v19, %v614_v14  ;;  %v129_v35 = vadd.f32 %v622_v24, %v620_v23  ;;  %v92_v38 = vld [vmem:[#allocation2 + $0xb8] sm:$0xff]  ;;  %v99_v40 = vld [vmem:[#allocation5 + $0x30] sm:$0xff]  ;;  %v101_v42 = vld [vmem:[#allocation5 + $0x40] sm:$0xff]  ;;  %v163_v44 = vmul.f32 %v622_v24, %v622_v24  ;;  %v165_v46 = vmul.f32 %v630_v28, %v630_v28 }
  0x3a   :  { %v100_v41 = vld [vmem:[#allocation5 + $0x38] sm:$0xff]  ;;  %v102_v49 = vld [vmem:[#allocation5 + $0x48] sm:$0xff]  ;;  %v103_v50 = vld [vmem:[#allocation5 + $0x50] sm:$0xff]  ;;  %v653_v52 = vadd.f32 %v99_v40, %v87_v30  ;;  %v657_v54 = vadd.f32 %v101_v42, %v89_v32  ;;  %v166_v59 = vmul.f32 %v632_v29, %v632_v29  ;;  %v167_v60 = vmul.f32 %v635_v34, %v635_v34 }
  0x3b   :  { %v145_v47 = vadd.f32 %v144_v33, %v616_v15  ;;  %v130_v48 = vadd.f32 %v129_v35, %v624_v25  ;;  %v104_v51 = vld [vmem:[#allocation5 + $0x58] sm:$0xff]  ;;  %v655_v53 = vadd.f32 %v100_v41, %v88_v31  ;;  %v659_v55 = vadd.f32 %v102_v49, %v90_v36  ;;  %v75_v56 = vld [vmem:[#allocation2 + $0x30] sm:$0xff]  ;;  %v77_v58 = vld [vmem:[#allocation2 + $0x40] sm:$0xff] }
  0x3c   :  { %v76_v57 = vld [vmem:[#allocation2 + $0x38] sm:$0xff]  ;;  %v78_v0 = vld [vmem:[#allocation2 + $0x48] sm:$0xff]  ;;  %v669_v1 = vadd.f32 %v99_v40, %v75_v56  ;;  %v671_v2 = vadd.f32 %v103_v50, %v91_v37  ;;  %v673_v3 = vadd.f32 %v104_v51, %v92_v38  ;;  %v79_v4 = vld [vmem:[#allocation2 + $0x50] sm:$0xff]  ;;  %v677_v7 = vadd.f32 %v101_v42, %v77_v58 }
  0x3d   :  { %v146_v61 = vadd.f32 %v145_v47, %v626_v26  ;;  %v131_v62 = vadd.f32 %v130_v48, %v630_v28  ;;  %v150_v63 = vadd.f32 %v655_v53, %v653_v52  ;;  %v80_v5 = vld [vmem:[#allocation2 + $0x58] sm:$0xff]  ;;  %v675_v6 = vadd.f32 %v100_v41, %v76_v57 }
  0x3e   :  { %v682_v11 = vadd.f32 %v102_v49, %v78_v0  ;;  %v168_v17 = vmul.f32 %v669_v1, %v669_v1  ;;  %v170_v19 = vmul.f32 %v677_v7, %v677_v7  ;;  %v694_v22 = vadd.f32 %v103_v50, %v79_v4 }
  0x3f   :  { %v147_v8 = vadd.f32 %v146_v61, %v628_v27  ;;  %v132_v9 = vadd.f32 %v131_v62, %v632_v29  ;;  %v151_v10 = vadd.f32 %v150_v63, %v657_v54  ;;  %v136_v16 = vadd.f32 %v675_v6, %v669_v1 }
  0x40   :  { %v169_v18 = vmul.f32 %v675_v6, %v675_v6  ;;  %v696_v30 = vadd.f32 %v104_v51, %v80_v5  ;;  %v171_v32 = vmul.f32 %v682_v11, %v682_v11  ;;  %v186_v35 = vadd.f32 %v163_v44, %v162_v43 }
  0x41   :  { %148 = vadd.xlane.f32.xlu1 %v147_v8  ;;  %v133_v20 = vadd.f32 %v132_v9, %v635_v34  ;;  %v152_v21 = vadd.f32 %v151_v10, %v659_v55  ;;  %v137_v31 = vadd.f32 %v136_v16, %v677_v7  ;;  %v180_v37 = vmul.f32 %v653_v52, %v653_v52 }
  0x42   :  { %v193_v33 = vadd.f32 %v169_v18, %v168_v17  ;;  %v181_v38 = vmul.f32 %v655_v53, %v655_v53  ;;  %v182_v40 = vmul.f32 %v657_v54, %v657_v54  ;;  %v172_v42 = vmul.f32 %v694_v22, %v694_v22 }
  0x43   :  { %134 = vadd.xlane.f32.xlu0 %v133_v20  ;;  %v153_v36 = vadd.f32 %v152_v21, %v671_v2  ;;  %v138_v41 = vadd.f32 %v137_v31, %v682_v11  ;;  %v187_v48 = vadd.f32 %v186_v35, %v164_v45  ;;  %v173_v44 = vmul.f32 %v696_v30, %v696_v30 }
  0x44   :  { %v194_v47 = vadd.f32 %v193_v33, %v170_v19  ;;  %v183_v49 = vmul.f32 %v659_v55, %v659_v55  ;;  %v207_v50 = vadd.f32 %v181_v38, %v180_v37  ;;  %v175_v58 = vmul.f32 %v612_v13, %v612_v13 }
  0x45   :  { %v154_v43 = vadd.f32 %v153_v36, %v673_v3  ;;  %v139_v51 = vadd.f32 %v138_v41, %v694_v22  ;;  %v188_v57 = vadd.f32 %v187_v48, %v165_v46  ;;  %v184_v45 = vmul.f32 %v671_v2, %v671_v2 }
  0x46   :  { %v195_v56 = vadd.f32 %v194_v47, %v171_v32  ;;  %v208_v61 = vadd.f32 %v207_v50, %v182_v40  ;;  %v176_v62 = vmul.f32 %v614_v14, %v614_v14  ;;  %v185_v5 = vmul.f32 %v673_v3, %v673_v3 }
  0x47   :  { %155 = vadd.xlane.f32.xlu1 %v154_v43  ;;  %v140_v63 = vadd.f32 %v139_v51, %v696_v30  ;;  %v189_v4 = vadd.f32 %v188_v57, %v166_v59  ;;  %v177_v46 = vmul.f32 %v616_v15, %v616_v15  ;;  %v200_v9 = vadd.f32 %v175_v58, %v641_v39 }
  0x48   :  { %v196_v0 = vadd.f32 %v195_v56, %v172_v42  ;;  %v209_v8 = vadd.f32 %v208_v61, %v183_v49  ;;  %v178_v18 = vmul.f32 %v626_v26, %v626_v26  ;;  %v179_v59 = vmul.f32 %v628_v27, %v628_v27 }
  0x49   :  { %141 = vadd.xlane.f32.xlu0 %v140_v63  ;;  %v190_v16 = vadd.f32 %v189_v4, %v167_v60  ;;  %v201_v19 = vadd.f32 %v200_v9, %v176_v62  ;;  %v284_v38 = vlaneseq }
  0x4a   :  { %v197_v10 = vadd.f32 %v196_v0, %v173_v44  ;;  %v210_v17 = vadd.f32 %v209_v8, %v184_v45 }
  0x4b   :  { %v202_v21 = vadd.f32 %v201_v19, %v177_v46  ;;  %v285_v43 = vshrl.u32 %v284_v38, 7 }
  0x4c   :  { %198 = vadd.xlane.f32.xlu1 %v197_v10  ;;  %v211_v20 = vadd.f32 %v210_v17, %v185_v5  ;;  %v282_v10 = vld [vmem:[#allocation7] sm:$0x3f] }
  0x4d   :  { %191 = vadd.xlane.f32.xlu0 %v190_v16  ;;  %v203_v31 = vadd.f32 %v202_v21, %v178_v18  ;;  %v286_v62 = vsub.s32 0, %v285_v43  ;;  %v290_v63 = vsub.s32 1, %v285_v43  ;;  %v294_v8 = vsub.s32 2, %v285_v43 }
  0x4e   :  { %v298_v16 = vsub.s32 3, %v285_v43  ;;  %v302_v17 = vsub.s32 4, %v285_v43  ;;  %v306_v19 = vsub.s32 5, %v285_v43 }
  0x4f   :  { %v204_v32 = vadd.f32 %v203_v31, %v179_v59  ;;  %v338_v59 = vld [vmem:[#allocation8] sm:$0x3f]  ;;  %v749_v21 = vrot.slane %v282_v10, %v286_v62  ;;  %v751_v31 = vrot.slane %v282_v10, %v290_v63 }
  0x50   :  { %212 = vadd.xlane.f32.xlu1 %v211_v20  ;;  %v761_v38 = vrot.slane %v338_v59, %v286_v62  ;;  %v771_v43 = vrot.slane %v338_v59, %v302_v17 }
  0x51   :  { %205 = vadd.xlane.f32.xlu0 %v204_v32  ;;  %v753_v32 = vrot.slane %v282_v10, %v294_v8 }
  0xca   :  { %v149_v39 = vpop.xlane.xlu1 %148 }
  0xcb   :  { %v743_v50 = vmul.f32 0.0013020834, %v149_v39  ;;  %v755_v39 = vrot.slane %v282_v10, %v298_v16 }
  0xcc   :  { %v135_v33 = vpop.xlane.xlu0 %134 }
  0xcd   :  { %v733_v36 = vmul.f32 0.0013020834, %v135_v33  ;;  %v220_v46 = vmul.f32 %v743_v50, %v743_v50  ;;  %v757_v33 = vrot.slane %v282_v10, %v302_v17 }
  0xcf   :  { %v218_v44 = vmul.f32 %v733_v36, %v733_v36  ;;  %v236_v62 = vsub.f32 %v624_v25, %v733_v36 }
  0xd0   :  { %v156_v35 = vpop.xlane.xlu1 %155 }
  0xd1   :  { %v737_v41 = vmul.f32 0.0013020834, %v156_v35 }
  0xd2   :  { %v142_v60 = vpop.xlane.xlu0 %141 }
  0xd3   :  { %v735_v37 = vmul.f32 0.0013020834, %v142_v60  ;;  %v221_v58 = vmul.f32 %v737_v41, %v737_v41  ;;  %v759_v60 = vrot.slane %v282_v10, %v306_v19  ;;  %v255_v25 = vsub.f32 %v659_v55, %v737_v41 }
  0xd5   :  { %v199_v40 = vpop.xlane.xlu1 %198  ;;  %v219_v47 = vmul.f32 %v735_v37, %v735_v37  ;;  %v244_v55 = vsub.f32 %v694_v22, %v735_v37 }
  0xd6   :  { %v215_v42 = vmul.f32 0.0013020834, %v199_v40  ;;  %v192_v48 = vpop.xlane.xlu0 %191  ;;  %v763_v40 = vrot.slane %v338_v59, %v290_v63  ;;  %v237_v63 = vsub.f32 %v630_v28, %v733_v36  ;;  %v240_v28 = vsub.f32 %v669_v1, %v735_v37 }
  0xd7   :  { %v214_v49 = vmul.f32 0.0013020834, %v192_v48  ;;  %v769_v48 = vrot.slane %v338_v59, %v298_v16  ;;  %v245_v1 = vsub.f32 %v696_v30, %v735_v37 }
  0xd8   :  { %v223_v51 = vsub.f32 %v215_v42, %v219_v47  ;;  %v765_v42 = vrot.slane %v338_v59, %v294_v8  ;;  %v246_v47 = vsub.f32 %v610_v12, %v743_v50 }
  0xd9   :  { %v213_v56 = vpop.xlane.xlu1 %212  ;;  %v222_v57 = vsub.f32 %v214_v49, %v218_v44  ;;  %v773_v44 = vrot.slane %v338_v59, %v306_v19  ;;  %v247_v49 = vsub.f32 %v612_v13, %v743_v50 }
  0xda   :  { %v217_v45 = vmul.f32 0.0013020834, %v213_v56  ;;  %v227_v61 = vadd.f32 1e-12, %v223_v51  ;;  %v206_v5 = vpop.xlane.xlu0 %205  ;;  %v248_v51 = vsub.f32 %v614_v14, %v743_v50  ;;  %v249_v56 = vsub.f32 %v616_v15, %v743_v50 }
  0xdb   :  { %v226_v0 = vadd.f32 1e-12, %v222_v57  ;;  %v216_v9 = vmul.f32 0.0013020834, %v206_v5  ;;  %v250_v57 = vsub.f32 %v626_v26, %v743_v50  ;;  %v252_v5 = vsub.f32 %v653_v52, %v737_v41 }
  0xdc   :  { %v225_v4 = vsub.f32 %v217_v45, %v221_v58  ;;  %444 = vrsqrt.f32 %v227_v61  ;;  %v251_v58 = vsub.f32 %v628_v27, %v743_v50  ;;  %v234_v45 = vsub.f32 %v620_v23, %v733_v36 }
  0xdd   :  { %446 = vrsqrt.f32 %v226_v0  ;;  %v224_v20 = vsub.f32 %v216_v9, %v220_v46  ;;  %v235_v61 = vsub.f32 %v622_v24, %v733_v36  ;;  %v238_v0 = vsub.f32 %v632_v29, %v733_v36 }
  0xde   :  { %v229_v18 = vadd.f32 1e-12, %v225_v4  ;;  %v239_v4 = vsub.f32 %v635_v34, %v733_v36  ;;  %v253_v23 = vsub.f32 %v655_v53, %v737_v41  ;;  %v254_v24 = vsub.f32 %v657_v54, %v737_v41 }
  0xdf   :  { %v228_v35 = vadd.f32 1e-12, %v224_v20  ;;  %v241_v29 = vsub.f32 %v675_v6, %v735_v37  ;;  %v242_v34 = vsub.f32 %v677_v7, %v735_v37  ;;  %v243_v52 = vsub.f32 %v682_v11, %v735_v37 }
  0xe0   :  { %448 = vrsqrt.f32 %v229_v18  ;;  %v256_v53 = vsub.f32 %v671_v2, %v737_v41  ;;  %v257_v54 = vsub.f32 %v673_v3, %v737_v41 }
  0xe1   :  { %450 = vrsqrt.f32 %v228_v35 }
  0xe9   :  { %v445_v36 = vpop.eup %444 }
  0xea   :  { %v447_v6 = vpop.eup %446  ;;  %v264_v8 = vmul.f32 %v445_v36, %v240_v28  ;;  %v265_v46 = vmul.f32 %v445_v36, %v241_v29  ;;  %v266_v7 = vmul.f32 %v445_v36, %v242_v34  ;;  %v267_v9 = vmul.f32 %v445_v36, %v243_v52 }
  0xeb   :  { %v268_v10 = vmul.f32 %v445_v36, %v244_v55  ;;  %v269_v11 = vmul.f32 %v445_v36, %v245_v1  ;;  %v258_v16 = vmul.f32 %v447_v6, %v234_v45  ;;  %v259_v17 = vmul.f32 %v447_v6, %v235_v61 }
  0xec   :  { %v320_v2 = vmul.f32 %v749_v21, %v264_v8  ;;  %v321_v18 = vmul.f32 %v751_v31, %v265_v46  ;;  %v322_v3 = vmul.f32 %v753_v32, %v266_v7  ;;  %v323_v22 = vmul.f32 %v755_v39, %v267_v9 }
  0xed   :  { %v324_v41 = vmul.f32 %v757_v33, %v268_v10  ;;  %v325_v30 = vmul.f32 %v759_v60, %v269_v11  ;;  %v260_v37 = vmul.f32 %v447_v6, %v236_v62  ;;  %v261_v19 = vmul.f32 %v447_v6, %v237_v63  ;;  %v449_v20 = vpop.eup %448 }
  0xee   :  { %v376_v59 = vadd.f32 %v761_v38, %v320_v2  ;;  %v377_v35 = vadd.f32 %v763_v40, %v321_v18  ;;  %v378_v45 = vadd.f32 %v765_v42, %v322_v3  ;;  %v379_v61 = vadd.f32 %v769_v48, %v323_v22 }
  0xef   :  { %v380_v28 = vadd.f32 %v771_v43, %v324_v41  ;;  %v381_v29 = vadd.f32 %v773_v44, %v325_v30  ;;  %v262_v34 = vmul.f32 %v447_v6, %v238_v0  ;;  %v263_v52 = vmul.f32 %v447_v6, %v239_v4  ;;  %v451_v6 = vpop.eup %450 }
  0xf0   :  { %400 = vst [vmem:[#allocation10 + $0x30] sm:$0xff] %v376_v59  ;;  %401 = vst [vmem:[#allocation10 + $0x38] sm:$0xff] %v377_v35  ;;  %v314_v62 = vmul.f32 %v749_v21, %v258_v16  ;;  %v315_v63 = vmul.f32 %v751_v31, %v259_v17  ;;  %v316_v36 = vmul.f32 %v753_v32, %v260_v37 }
  0xf1   :  { %402 = vst [vmem:[#allocation10 + $0x40] sm:$0xff] %v378_v45  ;;  %403 = vst [vmem:[#allocation10 + $0x48] sm:$0xff] %v379_v61  ;;  %v317_v55 = vmul.f32 %v755_v39, %v261_v19  ;;  %v318_v1 = vmul.f32 %v757_v33, %v262_v34  ;;  %v319_v8 = vmul.f32 %v759_v60, %v263_v52 }
  0xf2   :  { %404 = vst [vmem:[#allocation10 + $0x50] sm:$0xff] %v380_v28  ;;  %405 = vst [vmem:[#allocation10 + $0x58] sm:$0xff] %v381_v29  ;;  %v276_v0 = vmul.f32 %v449_v20, %v252_v5  ;;  %v277_v4 = vmul.f32 %v449_v20, %v253_v23  ;;  %v370_v46 = vadd.f32 %v761_v38, %v314_v62 }
  0xf3   :  { %v371_v7 = vadd.f32 %v763_v40, %v315_v63  ;;  %v372_v9 = vadd.f32 %v765_v42, %v316_v36  ;;  %v373_v10 = vadd.f32 %v769_v48, %v317_v55  ;;  %v374_v11 = vadd.f32 %v771_v43, %v318_v1 }
  0xf4   :  { %v375_v16 = vadd.f32 %v773_v44, %v319_v8  ;;  %v278_v17 = vmul.f32 %v449_v20, %v254_v24  ;;  %v279_v2 = vmul.f32 %v449_v20, %v255_v25  ;;  %394 = vst [vmem:[#allocation10] sm:$0xff] %v370_v46  ;;  %v280_v5 = vmul.f32 %v449_v20, %v256_v53 }
  0xf5   :  { %395 = vst [vmem:[#allocation10 + $0x8] sm:$0xff] %v371_v7  ;;  %396 = vst [vmem:[#allocation10 + $0x10] sm:$0xff] %v372_v9  ;;  %v281_v23 = vmul.f32 %v449_v20, %v257_v54  ;;  %v332_v18 = vmul.f32 %v749_v21, %v276_v0  ;;  %v333_v3 = vmul.f32 %v751_v31, %v277_v4 }
  0xf6   :  { %397 = vst [vmem:[#allocation10 + $0x18] sm:$0xff] %v373_v10  ;;  %398 = vst [vmem:[#allocation10 + $0x20] sm:$0xff] %v374_v11  ;;  %v334_v22 = vmul.f32 %v753_v32, %v278_v17  ;;  %v335_v41 = vmul.f32 %v755_v39, %v279_v2  ;;  %v270_v24 = vmul.f32 %v451_v6, %v246_v47 }
  0xf7   :  { %399 = vst [vmem:[#allocation10 + $0x28] sm:$0xff] %v375_v16  ;;  %v271_v25 = vmul.f32 %v451_v6, %v247_v49  ;;  %v336_v53 = vmul.f32 %v757_v33, %v280_v5  ;;  %v337_v54 = vmul.f32 %v759_v60, %v281_v23  ;;  %v388_v30 = vadd.f32 %v761_v38, %v332_v18 }
  0xf8   :  { %v389_v37 = vadd.f32 %v763_v40, %v333_v3  ;;  %v390_v19 = vadd.f32 %v765_v42, %v334_v22  ;;  %v391_v20 = vadd.f32 %v769_v48, %v335_v41  ;;  %v272_v12 = vmul.f32 %v451_v6, %v248_v51 }
  0xf9   :  { %v273_v13 = vmul.f32 %v451_v6, %v249_v56  ;;  %v392_v47 = vadd.f32 %v771_v43, %v336_v53  ;;  %v393_v49 = vadd.f32 %v773_v44, %v337_v54  ;;  %412 = vst [vmem:[#allocation10 + $0x90] sm:$0xff] %v388_v30  ;;  %v274_v59 = vmul.f32 %v451_v6, %v250_v57 }
  0xfa   :  { %413 = vst [vmem:[#allocation10 + $0x98] sm:$0xff] %v389_v37  ;;  %v275_v35 = vmul.f32 %v451_v6, %v251_v58  ;;  %414 = vst [vmem:[#allocation10 + $0xa0] sm:$0xff] %v390_v19  ;;  %v326_v14 = vmul.f32 %v749_v21, %v270_v24  ;;  %v327_v15 = vmul.f32 %v751_v31, %v271_v25 }
  0xfb   :  { %415 = vst [vmem:[#allocation10 + $0xa8] sm:$0xff] %v391_v20  ;;  %v328_v51 = vmul.f32 %v753_v32, %v272_v12  ;;  %v329_v56 = vmul.f32 %v755_v39, %v273_v13  ;;  %416 = vst [vmem:[#allocation10 + $0xb0] sm:$0xff] %v392_v47  ;;  %v330_v26 = vmul.f32 %v757_v33, %v274_v59 }
  0xfc   :  { %417 = vst [vmem:[#allocation10 + $0xb8] sm:$0xff] %v393_v49  ;;  %v331_v57 = vmul.f32 %v759_v60, %v275_v35  ;;  %v382_v27 = vadd.f32 %v761_v38, %v326_v14  ;;  %v383_v50 = vadd.f32 %v763_v40, %v327_v15 }
  0xfd   :  { %v384_v21 = vadd.f32 %v765_v42, %v328_v51  ;;  %v385_v31 = vadd.f32 %v769_v48, %v329_v56  ;;  %v386_v32 = vadd.f32 %v771_v43, %v330_v26 }
  0xfe   :  { %v387_v39 = vadd.f32 %v773_v44, %v331_v57  ;;  %406 = vst [vmem:[#allocation10 + $0x60] sm:$0xff] %v382_v27  ;;  %407 = vst [vmem:[#allocation10 + $0x68] sm:$0xff] %v383_v50 }
  0xff   :  { %408 = vst [vmem:[#allocation10 + $0x70] sm:$0xff] %v384_v21  ;;  %409 = vst [vmem:[#allocation10 + $0x78] sm:$0xff] %v385_v31 }
 0x100   :  { %410 = vst [vmem:[#allocation10 + $0x80] sm:$0xff] %v386_v32  ;;  %411 = vst [vmem:[#allocation10 + $0x88] sm:$0xff] %v387_v39 }
 0x101   :  { %543 = shalt.err (!%p540_p10)
}
 0x102   :  { %429 = dma.vmem_to_hbm [thread:$0]  %s424_s3, 3072, %s897_s4, [#allocation4], %s562_s20, %s562_s20, %s563_s21  }
 0x103   :  { %558 = dma.done.wait [#allocation4], 3072  }
 0x104   :  { %559 = vsyncadd [#allocation4], 4294964224 }
 0x105   :  { %433 = vsyncpa [#allocation3], 1 }
 0x106   :  { %434 = vsyncpa [#allocation6], 1 }
 0x107   :  { %435 = vsyncpa [#allocation9], 1 }
 0x108   :  { %436 = vsyncpa [#allocation4], 1 }

</bundles_post_ra>
